<compile_context>
chip_gen: v7x
topology: tpu7x:2x2x1
jax: 0.10.0
libtpu: 0.0.40
codegen_flags: <defaults>
</compile_context>

<pallas_src>
import functools

import jax
import jax.numpy as jnp
from jax.experimental import pallas as pl
from jax.experimental.pallas import tpu as pltpu


def _stat_mask_kernel(thresh_ref, x_ref, soft_ref, hard_ref, dil_ref,
                      *, inv_c, w, hw):
    # x block: (nb, C, H*W) for the current batch chunk; last dim is lane-dense.
    xb = x_ref[...]

    # summed_mask = sum_c (x == 0)  -- exact small counts, f32 accumulation.
    summed = jnp.sum((xb == 0).astype(jnp.float32), axis=1, keepdims=True)   # (nb,1,hw)

    # soft = summed / C  (as a multiply; exact for power-of-two C).
    soft = summed * jnp.float32(inv_c)
    thresh = thresh_ref[0]
    hardf = (soft > thresh).astype(jnp.float32)                              # {0., 1.}

    soft_ref[...] = soft                                                     # f32
    hard_ref[...] = hardf.astype(jnp.int8)                                   # 0/1 int8

    # ExpandMask (stride=1, padding=1): conv2d(hard, ones(3,3), pad=1) > 0.5,
    # computed as a separable shifted-accumulate on the flattened h*w lane
    # axis. pltpu.roll wraps around, so wrapped-in lanes are masked to zero.
    flat = jax.lax.broadcasted_iota(jnp.int32, hardf.shape, 2)               # 0..hw-1
    col = flat % w

    up = jnp.where(flat < w, 0.0,
                   pltpu.roll(hardf, shift=w, axis=2))                       # h[k - w]
    down = jnp.where(flat >= hw - w, 0.0,
                     pltpu.roll(hardf, shift=hw - w, axis=2))                # h[k + w]
    rows = hardf + up + down                                                 # vertical 1x3

    left = jnp.where(col == 0, 0.0,
                     pltpu.roll(rows, shift=1, axis=2))                      # r[k - 1]
    right = jnp.where(col == w - 1, 0.0,
                      pltpu.roll(rows, shift=hw - 1, axis=2))                # r[k + 1]
    dil_ref[...] = ((rows + left + right) > 0.5).astype(jnp.int8)            # 0/1 int8


def _pick_batch_block(n, bytes_per_image, budget_bytes=2 * 1024 * 1024):
    """Largest divisor of n whose x block stays under the VMEM budget."""
    nb = max(1, min(n, budget_bytes // max(1, bytes_per_image)))
    while n % nb:
        nb -= 1
    return nb


@functools.partial(jax.jit, static_argnames=("stride", "dilate_stride", "padding"))
def stat_mask_unit_forward(x, threshold, stride=1, dilate_stride=1, padding=1):
    """StatMaskUnit hot path in one Pallas kernel (grid over batch chunks)."""
    assert stride == 1, "TODO(synk): stride > 1 nearest-downsample not implemented"
    assert dilate_stride == 1, "TODO(synk): dilate_stride > 1 pad-kernel path not implemented"
    assert padding == 1

    n, c, h, w = x.shape
    hw = h * w
    # Wrapper-side layout plumbing only: contiguous reshape, no data movement.
    xf = x.reshape(n, c, hw)
    thresh = jnp.asarray(threshold, jnp.float32).reshape((1,))

    nb = _pick_batch_block(n, c * hw * x.dtype.itemsize)
    # TODO(synk): add a channel-chunk ("arbitrary") grid axis with a VMEM
    #             accumulator for activations where a single image's (C, H*W)
    #             block alone exceeds the VMEM budget.
    # TODO(synk): fuse active_positions (sum of hard) into the kernel as an
    #             SMEM scalar output to drop the (tiny) post-kernel reduction.

    kernel = functools.partial(_stat_mask_kernel, inv_c=1.0 / c, w=w, hw=hw)

    grid_spec = pltpu.PrefetchScalarGridSpec(
        num_scalar_prefetch=0,
        grid=(n // nb,),
        in_specs=[
            pl.BlockSpec(memory_space=pltpu.MemorySpace.SMEM),       # threshold (1,)
            pl.BlockSpec((nb, c, hw), lambda b: (b, 0, 0)),          # x
        ],
        out_specs=[
            pl.BlockSpec((nb, 1, hw), lambda b: (b, 0, 0)),          # soft  f32
            pl.BlockSpec((nb, 1, hw), lambda b: (b, 0, 0)),          # hard  int8
            pl.BlockSpec((nb, 1, hw), lambda b: (b, 0, 0)),          # dilate int8
        ],
    )

    soft, hard, hard_dilate = pl.pallas_call(
        kernel,
        grid_spec=grid_spec,
        out_shape=(
            jax.ShapeDtypeStruct((n, 1, hw), jnp.float32),
            jax.ShapeDtypeStruct((n, 1, hw), jnp.int8),
            jax.ShapeDtypeStruct((n, 1, hw), jnp.int8),
        ),
        compiler_params=pltpu.CompilerParams(
            dimension_semantics=("parallel",),
            vmem_limit_bytes=32 * 1024 * 1024),
    )(thresh, xf)

    # Free metadata reshapes back to NCHW-style (N, 1, H, W).
    return (soft.reshape(n, 1, h, w),
            hard.reshape(n, 1, h, w),
            hard_dilate.reshape(n, 1, h, w))


def make_mask(hard, soft=None):
    """Mirror of the PyTorch `Mask` metadata holder."""
    return {
        "hard": hard,
        "soft": soft,
        "active_positions": jnp.sum(hard),   # int8 sums promote to int32
        "total_positions": hard.size,
        "flops_per_position": 0,
    }


def stat_mask_unit(x, meta, init_thresh=0.5, stride=1, dilate_stride=1):
    soft, hard, hard_dilate = stat_mask_unit_forward(
        x, init_thresh, stride=stride, dilate_stride=dilate_stride)
    mask = make_mask(hard, soft)
    mask_dilate = make_mask(hard_dilate)    # computed as in the module
    dilate = False                          # module-level flag in the reference
    m = {"std": mask, "dilate": mask_dilate} if dilate else {"std": mask, "dilate": mask}
    meta["masks"].append(m)
    return m


def _reference(x, threshold):
    """Pure-JAX reference for validation."""
    n, c, h, w = x.shape
    summed = jnp.sum((x == 0.0).astype(jnp.int32), axis=1)
    soft = (summed.astype(jnp.float32) / c)[:, None]
    hard = (soft > threshold).astype(jnp.int32)
    dil = jax.lax.conv_general_dilated(
        hard.astype(jnp.float32), jnp.ones((1, 1, 3, 3), jnp.float32),
        (1, 1), ((1, 1), (1, 1)),
        dimension_numbers=("NCHW", "OIHW", "NCHW"))
    return soft, hard, dil > 0.5


if __name__ == "__main__":
    key = jax.random.PRNGKey(0)
    N, C, H, W = 2, 4, 16, 16
    u = jax.random.uniform(key, (N, C, H, W), dtype=jnp.float32)
    # Inject exact zeros so the (x == 0) statistic is non-trivial.
    x = jnp.where(u < 0.4, 0.0, u)

    meta = {"masks": []}
    m = stat_mask_unit(x, meta, init_thresh=0.5)
    jax.block_until_ready(m["std"]["hard"])

    soft_want, hard_want, dil_want = _reference(x, 0.5)
    assert jnp.allclose(m["std"]["soft"], soft_want)
    assert jnp.array_equal(m["std"]["hard"], hard_want)
    # 'dilate' entry equals 'std' mask when module-level dilate == False
    assert m["dilate"] is m["std"]
    # also validate the (internally computed) dilated mask path
    _, _, hard_dilate = stat_mask_unit_forward(x, 0.5)
    assert jnp.array_equal(hard_dilate, dil_want)
    assert int(m["std"]["active_positions"]) == int(jnp.sum(hard_want))
    assert m["std"]["total_positions"] == N * 1 * H * W

    print("KERNEL_OK")
</pallas_src>

<mosaic_0001>
module attributes {stable_mosaic.version = 11 : i64} {
  func.func @_stat_mask_kernel(%arg0: i32, %arg1: memref<1xf32, #tpu.memory_space<smem>>, %arg2: memref<2x4x256xf32, #tpu.memory_space<vmem>>, %arg3: memref<2x1x256xf32, #tpu.memory_space<vmem>>, %arg4: memref<2x1x256xi8, #tpu.memory_space<vmem>>, %arg5: memref<2x1x256xi8, #tpu.memory_space<vmem>>) attributes {dimension_semantics = [#tpu.dimension_semantics<parallel>], iteration_bounds = array<i64: 1>, scalar_prefetch = 0 : i64, scratch_operands = 0 : i64, tpu.core_type = #tpu.core_type<tc>, window_params = [{transform_indices = @transform_0, window_bounds = array<i64: 1>}, {transform_indices = @transform_1, window_bounds = array<i64: 2, 4, 256>}, {transform_indices = @transform_2, window_bounds = array<i64: 2, 1, 256>}, {transform_indices = @transform_3, window_bounds = array<i64: 2, 1, 256>}, {transform_indices = @transform_4, window_bounds = array<i64: 2, 1, 256>}]} {
    %c0 = arith.constant 0 : index
    %c0_0 = arith.constant 0 : index
    %c0_1 = arith.constant 0 : index
    %0 = vector.load %arg2[%c0, %c0_0, %c0_1] : memref<2x4x256xf32, #tpu.memory_space<vmem>>, vector<2x4x256xf32>
    %cst = arith.constant 0.000000e+00 : f32
    %1 = vector.broadcast %cst : f32 to vector<2x4x256xf32>
    %2 = arith.cmpf oeq, %0, %1 : vector<2x4x256xf32>
    %3 = arith.extui %2 : vector<2x4x256xi1> to vector<2x4x256xi32>
    %4 = arith.sitofp %3 : vector<2x4x256xi32> to vector<2x4x256xf32>
    %cst_2 = arith.constant dense<0.000000e+00> : vector<2x256xf32>
    %5 = vector.multi_reduction <add>, %4, %cst_2 [1] : vector<2x4x256xf32> to vector<2x256xf32>
    %6 = vector.shape_cast %5 : vector<2x256xf32> to vector<2x1x256xf32>
    %cst_3 = arith.constant 2.500000e-01 : f32
    %7 = vector.broadcast %cst_3 : f32 to vector<2x1x256xf32>
    %8 = arith.mulf %6, %7 : vector<2x1x256xf32>
    %c0_4 = arith.constant 0 : index
    %9 = memref.load %arg1[%c0_4] : memref<1xf32, #tpu.memory_space<smem>>
    %10 = vector.broadcast %9 : f32 to vector<2x1x256xf32>
    %11 = arith.cmpf ogt, %8, %10 : vector<2x1x256xf32>
    %12 = arith.extui %11 : vector<2x1x256xi1> to vector<2x1x256xi32>
    %13 = arith.sitofp %12 : vector<2x1x256xi32> to vector<2x1x256xf32>
    %c0_5 = arith.constant 0 : index
    %c0_6 = arith.constant 0 : index
    %c0_7 = arith.constant 0 : index
    %14 = vector.load %arg3[%c0_5, %c0_6, %c0_7] : memref<2x1x256xf32, #tpu.memory_space<vmem>>, vector<2x1x256xf32>
    tpu.vector_store %arg3[%c0_5, %c0_6, %c0_7], %8 {strides = array<i32>} : memref<2x1x256xf32, #tpu.memory_space<vmem>>, vector<2x1x256xf32>,
    %15 = arith.fptosi %13 : vector<2x1x256xf32> to vector<2x1x256xi8>
    %c0_8 = arith.constant 0 : index
    %c0_9 = arith.constant 0 : index
    %c0_10 = arith.constant 0 : index
    %16 = vector.load %arg4[%c0_8, %c0_9, %c0_10] : memref<2x1x256xi8, #tpu.memory_space<vmem>>, vector<2x1x256xi8>
    tpu.vector_store %arg4[%c0_8, %c0_9, %c0_10], %15 {strides = array<i32>} : memref<2x1x256xi8, #tpu.memory_space<vmem>>, vector<2x1x256xi8>,
    %17 = tpu.iota {dimensions = array<i32: 2>} : vector<2x1x256xi32>
    %c16_i32 = arith.constant 16 : i32
    %c0_i32 = arith.constant 0 : i32
    %18 = arith.cmpi eq, %c16_i32, %c0_i32 : i32
    %c1_i32 = arith.constant 1 : i32
    %19 = arith.select %18, %c1_i32, %c16_i32 : i32
    %20 = vector.broadcast %19 : i32 to vector<2x1x256xi32>
    %21 = arith.remsi %17, %20 : vector<2x1x256xi32>
    %c0_i32_11 = arith.constant 0 : i32
    %22 = vector.broadcast %c0_i32_11 : i32 to vector<2x1x256xi32>
    %23 = arith.cmpi ne, %21, %22 : vector<2x1x256xi32>
    %c0_i32_12 = arith.constant 0 : i32
    %24 = vector.broadcast %c0_i32_12 : i32 to vector<2x1x256xi32>
    %25 = arith.cmpi slt, %21, %24 : vector<2x1x256xi32>
    %c0_i32_13 = arith.constant 0 : i32
    %26 = arith.cmpi slt, %19, %c0_i32_13 : i32
    %27 = vector.broadcast %26 : i1 to vector<2x1x256xi1>
    %28 = vector.broadcast %27 : vector<2x1x256xi1> to vector<2x1x256xi1>
    %29 = arith.xori %25, %28 : vector<2x1x256xi1>
    %30 = arith.andi %29, %23 : vector<2x1x256xi1>
    %31 = vector.broadcast %19 : i32 to vector<2x1x256xi32>
    %32 = arith.addi %21, %31 : vector<2x1x256xi32>
    %33 = arith.select %30, %32, %21 : vector<2x1x256xi1>, vector<2x1x256xi32>
    %c16_i32_14 = arith.constant 16 : i32
    %34 = vector.broadcast %c16_i32_14 : i32 to vector<2x1x256xi32>
    %35 = arith.cmpi slt, %17, %34 : vector<2x1x256xi32>
    %c16_i32_15 = arith.constant 16 : i32
    %36 = tpu.dynamic_rotate %13 by %c16_i32_15 dim 2 : vector<2x1x256xf32>, i32 -> vector<2x1x256xf32>
    %cst_16 = arith.constant 0.000000e+00 : f32
    %37 = vector.broadcast %cst_16 : f32 to vector<2x1x256xf32>
    %38 = arith.select %35, %37, %36 : vector<2x1x256xi1>, vector<2x1x256xf32>
    %c240_i32 = arith.constant 240 : i32
    %39 = vector.broadcast %c240_i32 : i32 to vector<2x1x256xi32>
    %40 = arith.cmpi sge, %17, %39 : vector<2x1x256xi32>
    %c240_i32_17 = arith.constant 240 : i32
    %41 = tpu.dynamic_rotate %13 by %c240_i32_17 dim 2 : vector<2x1x256xf32>, i32 -> vector<2x1x256xf32>
    %cst_18 = arith.constant 0.000000e+00 : f32
    %42 = vector.broadcast %cst_18 : f32 to vector<2x1x256xf32>
    %43 = arith.select %40, %42, %41 : vector<2x1x256xi1>, vector<2x1x256xf32>
    %44 = arith.addf %13, %38 : vector<2x1x256xf32>
    %45 = arith.addf %44, %43 : vector<2x1x256xf32>
    %c0_i32_19 = arith.constant 0 : i32
    %46 = vector.broadcast %c0_i32_19 : i32 to vector<2x1x256xi32>
    %47 = arith.cmpi eq, %33, %46 : vector<2x1x256xi32>
    %c1_i32_20 = arith.constant 1 : i32
    %48 = tpu.dynamic_rotate %45 by %c1_i32_20 dim 2 : vector<2x1x256xf32>, i32 -> vector<2x1x256xf32>
    %cst_21 = arith.constant 0.000000e+00 : f32
    %49 = vector.broadcast %cst_21 : f32 to vector<2x1x256xf32>
    %50 = arith.select %47, %49, %48 : vector<2x1x256xi1>, vector<2x1x256xf32>
    %c15_i32 = arith.constant 15 : i32
    %51 = vector.broadcast %c15_i32 : i32 to vector<2x1x256xi32>
    %52 = arith.cmpi eq, %33, %51 : vector<2x1x256xi32>
    %c255_i32 = arith.constant 255 : i32
    %53 = tpu.dynamic_rotate %45 by %c255_i32 dim 2 : vector<2x1x256xf32>, i32 -> vector<2x1x256xf32>
    %cst_22 = arith.constant 0.000000e+00 : f32
    %54 = vector.broadcast %cst_22 : f32 to vector<2x1x256xf32>
    %55 = arith.select %52, %54, %53 : vector<2x1x256xi1>, vector<2x1x256xf32>
    %56 = arith.addf %45, %50 : vector<2x1x256xf32>
    %57 = arith.addf %56, %55 : vector<2x1x256xf32>
    %cst_23 = arith.constant 5.000000e-01 : f32
    %58 = vector.broadcast %cst_23 : f32 to vector<2x1x256xf32>
    %59 = arith.cmpf ogt, %57, %58 : vector<2x1x256xf32>
    %60 = arith.extui %59 : vector<2x1x256xi1> to vector<2x1x256xi8>
    %c0_24 = arith.constant 0 : index
    %c0_25 = arith.constant 0 : index
    %c0_26 = arith.constant 0 : index
    %61 = vector.load %arg5[%c0_24, %c0_25, %c0_26] : memref<2x1x256xi8, #tpu.memory_space<vmem>>, vector<2x1x256xi8>
    tpu.vector_store %arg5[%c0_24, %c0_25, %c0_26], %60 {strides = array<i32>} : memref<2x1x256xi8, #tpu.memory_space<vmem>>, vector<2x1x256xi8>,
    return
  }
  func.func @transform_0(%arg0: i32) -> i32 {
    %c0_i32 = arith.constant 0 : i32
    %c0_i32_0 = arith.constant 0 : i32
    return %c0_i32 : i32
  }
  func.func @transform_1(%arg0: i32) -> (i32, i32, i32) {
    %c0_i32 = arith.constant 0 : i32
    %c0_i32_0 = arith.constant 0 : i32
    %c0_i32_1 = arith.constant 0 : i32
    return %arg0, %c0_i32, %c0_i32_0 : i32, i32, i32
  }
  func.func @transform_2(%arg0: i32) -> (i32, i32, i32) {
    %c0_i32 = arith.constant 0 : i32
    %c0_i32_0 = arith.constant 0 : i32
    %c0_i32_1 = arith.constant 0 : i32
    return %arg0, %c0_i32, %c0_i32_0 : i32, i32, i32
  }
  func.func @transform_3(%arg0: i32) -> (i32, i32, i32) {
    %c0_i32 = arith.constant 0 : i32
    %c0_i32_0 = arith.constant 0 : i32
    %c0_i32_1 = arith.constant 0 : i32
    return %arg0, %c0_i32, %c0_i32_0 : i32, i32, i32
  }
  func.func @transform_4(%arg0: i32) -> (i32, i32, i32) {
    %c0_i32 = arith.constant 0 : i32
    %c0_i32_0 = arith.constant 0 : i32
    %c0_i32_1 = arith.constant 0 : i32
    return %arg0, %c0_i32, %c0_i32_0 : i32, i32, i32
  }
}

</mosaic_0001>

<bundles_post_ra>
// kernel: stat_mask_unit_forward.1
= control target key start
LH: loop header
LB: loop body
LE: loop exit
PB: predicated region body
PF: predicated region fallthrough
CT: control target
= control target key end

     0   :  { %vm31_vm0 = vcmask 1043456   ;;  %v408_v2 = vmov 0.0   ;;  %v409_v21 = vmov 1966171168   ;;  %v86_v27 = vlaneseq  ;;  %s411_s20 = smov 16   ;;  %s412_s28 = smov 1   ;;  %s594_s1 = inlined_call_operand.vmem [shape: f32[2,4,256], index: 1, kind: input, shape index: {}]   ;;  %s595_s0 = inlined_call_operand.<no memory space> [shape: f32[1], index: 0, kind: input, shape index: {}]   ;;  %s596_s2 = inlined_call_operand.vmem [shape: f32[2,1,256], index: 2, kind: output, shape index: {0}]   ;;  %s597_s3 = inlined_call_operand.vmem [shape: s8[2,1,256], index: 3, kind: output, shape index: {1}]   ;;  %s598_s4 = inlined_call_operand.vmem [shape: s8[2,1,256], index: 4, kind: output, shape index: {2}]  }
   0x1   :  { %v17_v0 = vld [vmem:[%s594_s1] sm:$0xff]  ;;  %v18_v1 = vld [vmem:[%s594_s1 + $0x8] sm:$0xff]  ;;  %v84_v22 = vunpack.c.l.s4 %v409_v21  ;;  %v65_v38 = vstv %s595_s0  ;;  %s410_s0 = smov 112   ;;  %vm178_vm11 = vcmask 1040384   ;;  %vm179_vm12 = vsmask.f32 0 }
   0x2   :  { %vm19_vm1 = vcmp.eq.f32.partialorder %v17_v0, 0.0  ;;  %vm20_vm2 = vcmp.eq.f32.partialorder %v18_v1, 0.0  ;;  %v87_v33 = vshrl.u32 %v86_v27, 7  ;;  %vm116_vm7 = vcmp.lt.s32.totalorder %v86_v27, 256  ;;  %vm180_vm13 = vmand %vm178_vm11, %vm179_vm12  ;;  %s413_s7 = smov 127  }
   0x3   :  { %v373_v3 = vsel %vm19_vm1, 1.0, %v408_v2  ;;  %v374_v4 = vsel %vm20_vm2, 1.0, %v408_v2  ;;  %v85_v32 = vunpack.c.0.s8 %v84_v22  ;;  %vm181_vm14 = vcmask 1041409  }
   0x4   :  { %v27_v5 = vcombine.high %v373_v3, %v373_v3  ;;  %v28_v6 = vcombine.high %v374_v4, %v374_v4  ;;  %v32_v7 = vsel %vm31_vm0, %v373_v3, 0.0  ;;  %v46_v8 = vsel %vm31_vm0, %v374_v4, 0.0 }
   0x5   :  { %v33_v9 = vrot.slane %v32_v7, 4  ;;  %v47_v10 = vrot.slane %v46_v8, 4  ;;  %v451_v43 = vsub.s32 %v85_v32, %v87_v33  ;;  %vm182_vm15 = vsmask.f32 1024 }
   0x6   :  { %v39_v11 = vsel %vm31_vm0, %v27_v5, 0.0  ;;  %v53_v12 = vsel %vm31_vm0, %v28_v6, 0.0  ;;  %vm183_vm0 = vmand %vm181_vm14, %vm182_vm15 }
   0x7   :  { %v34_v13 = vadd.f32 %v33_v9, %v32_v7  ;;  %v40_v14 = vrot.slane %v39_v11, 4  ;;  %v48_v15 = vadd.f32 %v47_v10, %v46_v8  ;;  %v54_v16 = vrot.slane %v53_v12, 4  ;;  %vm522_vm1 = vmor %vm183_vm0, %vm180_vm13 }
   0x9   :  { %v35_v17 = vrot.slane %v34_v13, 2  ;;  %v41_v18 = vadd.f32 %v40_v14, %v39_v11  ;;  %v49_v19 = vrot.slane %v48_v15, 2  ;;  %v55_v20 = vadd.f32 %v54_v16, %v53_v12 }
   0xb   :  { %v36_v23 = vadd.f32 %v35_v17, %v34_v13  ;;  %v42_v24 = vrot.slane %v41_v18, 2  ;;  %v50_v25 = vadd.f32 %v49_v19, %v48_v15  ;;  %v56_v26 = vrot.slane %v55_v20, 2 }
   0xd   :  { %v37_v28 = vrot.slane %v36_v23, 1  ;;  %v43_v29 = vadd.f32 %v42_v24, %v41_v18  ;;  %v51_v30 = vrot.slane %v50_v25, 1  ;;  %v57_v31 = vadd.f32 %v56_v26, %v55_v20 }
   0xf   :  { %v38_v34 = vadd.f32 %v37_v28, %v36_v23  ;;  %v44_v35 = vrot.slane %v43_v29, 1  ;;  %v52_v36 = vadd.f32 %v51_v30, %v50_v25  ;;  %v58_v37 = vrot.slane %v57_v31, 1 }
  0x11   :  { %v45_v39 = vadd.f32 %v44_v35, %v43_v29  ;;  %v59_v40 = vadd.f32 %v58_v37, %v57_v31  ;;  %v60_v41 = vmul.f32 0.25, %v38_v34  ;;  %v62_v42 = vmul.f32 0.25, %v52_v36 }
  0x13   :  { %v61_v44 = vmul.f32 0.25, %v45_v39  ;;  %v63_v45 = vmul.f32 0.25, %v59_v40  ;;  %vm66_vm3 = vcmp.gt.f32.partialorder %v60_v41, %v65_v38  ;;  %vm68_vm4 = vcmp.gt.f32.partialorder %v62_v42, %v65_v38  ;;  %v188_v39 = vld [vmem:[%s597_s3 + $0x2] sm:$0x3] }
  0x14   :  { %v454_v46 = vsel %vm66_vm3, 1.0, %v408_v2  ;;  %v457_v47 = vsel %vm68_vm4, 1.0, %v408_v2 }
  0x15   :  { %v82_v48 = vcombine.low %v60_v41, %v61_v44  ;;  %v97_v49 = vcombine.low %v62_v42, %v63_v45  ;;  %v398_v50 = vpack.i.bf16 %v457_v47, %v454_v46  ;;  %vm67_vm5 = vcmp.gt.f32.partialorder %v61_v44, %v65_v38 }
  0x16   :  { %vm69_vm6 = vcmp.gt.f32.partialorder %v63_v45, %v65_v38  ;;  %v376_v53 = vsel %vm67_vm5, 1.0, %v408_v2  ;;  %v122_v58 = vtrunc.f32 %v457_v47  ;;  %v120_v59 = vtrunc.f32 %v454_v46  ;;  %v185_v38 = vld [vmem:[%s597_s3] sm:$0x3] }
  0x17   :  { %v89_v51 = vrot.slane %v82_v48, %v451_v43  ;;  %v104_v52 = vrot.slane %v97_v49, %v451_v43  ;;  %399 = vrot.lane.b32.xlu1 %v398_v50, %s410_s0  ;;  %389 = vrot.lane.b32.xlu0 %v398_v50, %s411_s20  ;;  %v378_v54 = vsel %vm69_vm6, 1.0, %v408_v2  ;;  %v121_v61 = vtrunc.f32 %v376_v53 }
  0x18   :  { %v403_v57 = vpack.i.bf16 %v378_v54, %v376_v53  ;;  %v123_v60 = vtrunc.f32 %v378_v54  ;;  %v136_v62 = vpack.c.f32.eXmY %v122_v58, %v122_v58, 312  ;;  %v124_v63 = vpack.c.f32.eXmY %v120_v59, %v120_v59, 312 }
  0x19   :  { %v96_v55 = vrot.slane %v89_v51, %v451_v43  ;;  %v111_v56 = vrot.slane %v104_v52, %v451_v43  ;;  %v130_v1 = vpack.c.f32.eXmY %v121_v61, %v121_v61, 312  ;;  %v475_v2 = vand.u32 127, %v86_v27 }
  0x1a   :  { %v142_v0 = vpack.c.f32.eXmY %v123_v60, %v123_v60, 312 }
  0x1b   :  { %118 = vst.msk [vmem:[%s596_s2] sm:$0x3] %vm116_vm7, %v96_v55  ;;  %119 = vst.msk [vmem:[%s596_s2 + $0x2] sm:$0x3] %vm116_vm7, %v111_v56  ;;  %404 = vrot.lane.b32.xlu1 %v403_v57, %s410_s0  ;;  %394 = vrot.lane.b32.xlu0 %v403_v57, %s411_s20  ;;  %v379_v4 = vpack.c.b8 %v130_v1, %v124_v63  ;;  %v478_v6 = vadd.s32 128, %v475_v2  ;;  %vm218_vm8 = vcmp.lt.s32.totalorder %v475_v2, 16 }
  0x1c   :  { %v380_v3 = vpack.c.b8 %v142_v0, %v136_v62  ;;  %vm246_vm10 = vcmp.lt.s32.totalorder %v475_v2, 112  ;;  %v198_v50 = vand.u32 15, %v475_v2  ;;  %vm273_vm2 = vcmp.lt.s32.totalorder %v475_v2, 1 }
  0x1d   :  { %v155_v9 = vrot.slane %v379_v4, %v451_v43  ;;  %vm237_vm9 = vcmp.ge.s32.totalorder %v478_v6, 240  ;;  %v205_v51 = vand.u32 15, %v478_v6  ;;  %vm292_vm5 = vcmp.lt.s32.totalorder %v475_v2, 127 }
  0x1e   :  { %v170_v8 = vrot.slane %v380_v3, %v451_v43  ;;  %vm540_vm3 = vcmp.eq.s32.totalorder %v198_v50, 0  ;;  %vm555_vm6 = vcmp.eq.s32.totalorder %v198_v50, 15 }
  0x1f   :  { %v162_v21 = vrot.slane %v155_v9, %v451_v43  ;;  %vm544_vm4 = vcmp.eq.s32.totalorder %v205_v51, 0  ;;  %vm559_vm7 = vcmp.eq.s32.totalorder %v205_v51, 15 }
  0x20   :  { %v177_v20 = vrot.slane %v170_v8, %v451_v43 }
  0x89   :  { %v400_v5 = vpop.permute.xlu1 %399  ;;  %v390_v7 = vpop.permute.xlu0 %389 }
  0x8a   :  { %v402_v11 = vunpack.i.h.bf16 %v400_v5  ;;  %v401_v12 = vunpack.i.l.bf16 %v400_v5  ;;  %v392_v16 = vunpack.i.h.bf16 %v390_v7  ;;  %v391_v17 = vunpack.i.l.bf16 %v390_v7 }
  0x8d   :  { %v405_v10 = vpop.permute.xlu1 %404  ;;  %v395_v15 = vpop.permute.xlu0 %394 }
  0x8e   :  { %v407_v13 = vunpack.i.h.bf16 %v405_v10  ;;  %v406_v14 = vunpack.i.l.bf16 %v405_v10  ;;  %v397_v18 = vunpack.i.h.bf16 %v395_v15  ;;  %v396_v19 = vunpack.i.l.bf16 %v395_v15 }
  0x90   :  { %v250_v22 = vsel %vm246_vm10, %v407_v13, %v402_v11  ;;  %v249_v23 = vsel %vm246_vm10, %v406_v14, %v401_v12  ;;  %v228_v24 = vsel %vm218_vm8, %v391_v17, %v396_v19  ;;  %v229_v25 = vsel %vm218_vm8, %v392_v16, %v397_v18 }
  0x91   :  { %v230_v26 = vsel %vm218_vm8, %v396_v19, %v391_v17  ;;  %v231_v27 = vsel %vm218_vm8, %v397_v18, %v392_v16  ;;  %v254_v28 = vsel %vm237_vm9, 0.0, %v250_v22  ;;  %v258_v29 = vadd.f32 %v378_v54, %v229_v25 }
  0x92   :  { %v252_v30 = vsel %vm237_vm9, 0.0, %v249_v23  ;;  %v256_v31 = vadd.f32 %v376_v53, %v228_v24  ;;  %v234_v32 = vsel %vm218_vm8, 0.0, %v231_v27  ;;  %v232_v33 = vsel %vm218_vm8, 0.0, %v230_v26 }
  0x93   :  { %v262_v34 = vadd.f32 %v258_v29, %v254_v28  ;;  %v257_v36 = vadd.f32 %v457_v47, %v234_v32  ;;  %v255_v37 = vadd.f32 %v454_v46, %v232_v33  ;;  %v248_v40 = vsel %vm246_vm10, %v402_v11, %v407_v13  ;;  %v358_v28 = vld [vmem:[%s598_s4 + $0x2] sm:$0x3] }
  0x94   :  { %v507_v35 = vadd.f32 %v256_v31, %v252_v30  ;;  %v247_v41 = vsel %vm246_vm10, %v401_v12, %v406_v14  ;;  %v189_v46 = vsel %vm522_vm1, %v177_v20, %v188_v39  ;;  %v186_v47 = vsel %vm522_vm1, %v162_v21, %v185_v38 }
  0x95   :  { %271 = vrot.lane.b32.xlu1 %v262_v34, %s412_s28  ;;  %v261_v44 = vadd.f32 %v257_v36, %v248_v40  ;;  %v259_v45 = vadd.f32 %v255_v37, %v247_v41  ;;  %190 = vst [vmem:[%s597_s3 + $0x2] sm:$0x3] %v189_v46  ;;  %187 = vst [vmem:[%s597_s3] sm:$0x3] %v186_v47  ;;  %v414_v22 = vmov 0  }
  0x96   :  { %269 = vrot.lane.b32.xlu0 %v507_v35, %s412_s28 }
  0x99   :  { %267 = vrot.lane.b32.xlu1 %v261_v44, %s412_s28 }
  0x9a   :  { %265 = vrot.lane.b32.xlu0 %v259_v45, %s412_s28 }
  0x9d   :  { %286 = vrot.lane.b32.xlu1 %v261_v44, %s413_s7 }
  0x9e   :  { %284 = vrot.lane.b32.xlu0 %v259_v45, %s413_s7 }
  0xa1   :  { %290 = vrot.lane.b32.xlu1 %v262_v34, %s413_s7 }
  0xa2   :  { %288 = vrot.lane.b32.xlu0 %v507_v35, %s413_s7 }
 0x107   :  { %v272_v48 = vpop.permute.xlu1 %271 }
 0x108   :  { %v270_v49 = vpop.permute.xlu0 %269 }
 0x10b   :  { %v268_v52 = vpop.permute.xlu1 %267 }
 0x10c   :  { %v266_v53 = vpop.permute.xlu0 %265  ;;  %v275_v56 = vsel %vm273_vm2, %v268_v52, %v272_v48  ;;  %v277_v57 = vsel %vm273_vm2, %v272_v48, %v268_v52 }
 0x10d   :  { %v276_v58 = vsel %vm273_vm2, %v270_v49, %v266_v53  ;;  %v280_v61 = vsel %vm540_vm3, 0.0, %v277_v57  ;;  %v281_v62 = vsel %vm544_vm4, 0.0, %v275_v56  ;;  %v274_v63 = vsel %vm273_vm2, %v266_v53, %v270_v49 }
 0x10e   :  { %v278_v0 = vsel %vm540_vm3, 0.0, %v276_v58  ;;  %v303_v4 = vadd.f32 %v280_v61, %v261_v44  ;;  %v304_v5 = vadd.f32 %v281_v62, %v262_v34  ;;  %v279_v6 = vsel %vm544_vm4, 0.0, %v274_v63  ;;  %v355_v34 = vld [vmem:[%s598_s4] sm:$0x3] }
 0x10f   :  { %v287_v59 = vpop.permute.xlu1 %286  ;;  %v301_v7 = vadd.f32 %v278_v0, %v259_v45  ;;  %v302_v17 = vadd.f32 %v279_v6, %v507_v35 }
 0x110   :  { %v285_v60 = vpop.permute.xlu0 %284 }
 0x113   :  { %v291_v8 = vpop.permute.xlu1 %290 }
 0x114   :  { %v289_v9 = vpop.permute.xlu0 %288  ;;  %v294_v10 = vsel %vm292_vm5, %v287_v59, %v291_v8  ;;  %v296_v11 = vsel %vm292_vm5, %v291_v8, %v287_v59 }
 0x115   :  { %v293_v12 = vsel %vm292_vm5, %v285_v60, %v289_v9  ;;  %v295_v2 = vsel %vm292_vm5, %v289_v9, %v285_v60  ;;  %v299_v13 = vsel %vm555_vm6, 0.0, %v294_v10  ;;  %v300_v14 = vsel %vm559_vm7, 0.0, %v296_v11 }
 0x116   :  { %v297_v15 = vsel %vm555_vm6, 0.0, %v293_v12  ;;  %v298_v16 = vsel %vm559_vm7, 0.0, %v295_v2  ;;  %v307_v18 = vadd.f32 %v303_v4, %v299_v13  ;;  %v308_v19 = vadd.f32 %v304_v5, %v300_v14 }
 0x117   :  { %v305_v20 = vadd.f32 %v301_v7, %v297_v15  ;;  %v306_v21 = vadd.f32 %v302_v17, %v298_v16 }
 0x118   :  { %vm311_vm8 = vcmp.gt.f32.partialorder %v307_v18, 0.5  ;;  %vm312_vm9 = vcmp.gt.f32.partialorder %v308_v19, 0.5 }
 0x119   :  { %vm317_vm10 = vmpackc.low %vm311_vm8, %vm311_vm8  ;;  %vm309_vm12 = vcmp.gt.f32.partialorder %v305_v20, 0.5  ;;  %vm310_vm15 = vcmp.gt.f32.partialorder %v306_v21, 0.5 }
 0x11a   :  { %vm318_vm11 = vmpackc.even %vm317_vm10, %vm317_vm10 }
 0x11b   :  { %vm319_vm13 = vmpackc.low %vm312_vm9, %vm312_vm9  ;;  %v323_v23 = vsel %vm318_vm11, 16843009, %v414_v22 }
 0x11c   :  { %vm320_vm14 = vmpackc.even %vm319_vm13, %vm319_vm13 }
 0x11d   :  { %v324_v24 = vsel %vm320_vm14, 16843009, %v414_v22  ;;  %vm313_vm0 = vmpackc.low %vm309_vm12, %vm309_vm12 }
 0x11e   :  { %v340_v25 = vcombine.low %v323_v23, %v324_v24  ;;  %vm314_vm2 = vmpackc.even %vm313_vm0, %vm313_vm0 }
 0x11f   :  { %vm315_vm3 = vmpackc.low %vm310_vm15, %vm310_vm15  ;;  %v321_v26 = vsel %vm314_vm2, 16843009, %v414_v22 }
 0x120   :  { %v347_v27 = vrot.slane %v340_v25, %v451_v43  ;;  %vm316_vm4 = vmpackc.even %vm315_vm3, %vm315_vm3 }
 0x121   :  { %v322_v29 = vsel %vm316_vm4, 16843009, %v414_v22 }
 0x122   :  { %v354_v30 = vrot.slane %v347_v27, %v451_v43  ;;  %v325_v31 = vcombine.low %v321_v26, %v322_v29 }
 0x124   :  { %v359_v32 = vsel %vm522_vm1, %v354_v30, %v358_v28  ;;  %v332_v33 = vrot.slane %v325_v31, %v451_v43 }
 0x125   :  { %360 = vst [vmem:[%s598_s4 + $0x2] sm:$0x3] %v359_v32 }
 0x126   :  { %v339_v35 = vrot.slane %v332_v33, %v451_v43 }
 0x128   :  { %v356_v36 = vsel %vm522_vm1, %v339_v35, %v355_v34 }
 0x129   :  { %357 = vst [vmem:[%s598_s4] sm:$0x3] %v356_v36 }

</bundles_post_ra>
